<compile_context>
chip_gen: v5e
topology: v5e:2x2
jax: 0.10.0
libtpu: 0.0.40
codegen_flags: <defaults>
</compile_context>

<pallas_src>
import jax
import jax.numpy as jnp
from jax.experimental import pallas as pl
from jax.experimental.pallas import tpu as pltpu


def _round_up(x, m):
    return ((x + m - 1) // m) * m


def _pick_batch_tile(batch, cap=64):
    """Largest batch tile <= cap that divides batch and keeps blocks (8,128)-legal."""
    if batch <= cap:
        return batch
    for d in range(cap, 0, -1):
        if batch % d == 0 and d % 8 == 0:
            return d
    return batch  # fall back to a single block


def cnn_kernel(x_ref, w_ref, b_ref, o_ref):
    """x_ref: (TB, Lp, KCp) bf16, w_ref: (KCp, Fp) bf16, b_ref: (1, Fp) f32,
    o_ref: (TB, Fp) f32."""
    TB, Lp, KCp = x_ref.shape
    Fp = w_ref.shape[1]

    # One lane-dense MXU matmul: (TB*Lp, KCp) @ (KCp, Fp), f32 accumulate.
    # Lp is a multiple of 8, so this reshape does not cross (8,128) tiles.
    x2d = x_ref[...].reshape(TB * Lp, KCp)
    s = jnp.dot(x2d, w_ref[...], preferred_element_type=jnp.float32)
    s = s.reshape(TB, Lp, Fp)

    # Max over time first, then bias + ReLU (both commute with the max).
    m = jnp.max(s, axis=1)                         # (TB, Fp)
    o_ref[...] = jnp.maximum(m + b_ref[...], 0.0)  # lane-dense full-width store


def cnn_forward(x_ncl, weight_fck, bias_f):
    """Matches CNN.forward: x (B, C, L), weight (F, C, K), bias (F,) -> (B, F)."""
    B, C, L = x_ncl.shape
    Fout, _, K = weight_fck.shape
    assert L >= K, "max_word_length must be >= kernel_size"
    L_out = L - K + 1

    KC = K * C
    KCp = _round_up(KC, 128)     # lane-dense contraction dim
    Fp = _round_up(Fout, 128)    # lane-dense output / filter dim
    Lp = _round_up(L_out, 8)     # sublane-aligned time dim
    TB = _pick_batch_tile(B)

    # ---- layout plumbing (plain JAX, outside the kernel) ----
    x_nlc = jnp.transpose(x_ncl, (0, 2, 1)).astype(jnp.float32)      # (B, L, C)
    # im2col: x_unf[b, t, (k, c)] = x[b, c, t + k]
    x_unf = jnp.stack([x_nlc[:, k:k + L_out, :] for k in range(K)], axis=2)
    x_unf = x_unf.reshape(B, L_out, KC)
    # Pad time by edge replication (duplicates cannot change the max) and pad
    # the contraction dim with zeros; cast MXU operands to bf16.
    x_unf = jnp.pad(x_unf, ((0, 0), (0, Lp - L_out), (0, 0)), mode="edge")
    x_unf = jnp.pad(x_unf, ((0, 0), (0, 0), (0, KCp - KC)))
    x_unf = x_unf.astype(jnp.bfloat16)

    w_kcf = jnp.transpose(weight_fck, (2, 1, 0)).reshape(KC, Fout).astype(jnp.float32)
    w_pad = jnp.pad(w_kcf, ((0, KCp - KC), (0, Fp - Fout))).astype(jnp.bfloat16)
    b_pad = jnp.pad(bias_f.astype(jnp.float32), (0, Fp - Fout)).reshape(1, Fp)

    out_padded = pl.pallas_call(
        cnn_kernel,
        out_shape=jax.ShapeDtypeStruct((B, Fp), jnp.float32),
        grid_spec=pltpu.PrefetchScalarGridSpec(
            num_scalar_prefetch=0,
            grid=(B // TB,),
            in_specs=[
                pl.BlockSpec((TB, Lp, KCp), lambda i: (i, 0, 0)),  # batch tile
                pl.BlockSpec((KCp, Fp), lambda i: (0, 0)),         # weight (resident)
                pl.BlockSpec((1, Fp), lambda i: (0, 0)),           # bias   (resident)
            ],
            out_specs=pl.BlockSpec((TB, Fp), lambda i: (i, 0)),
        ),
        compiler_params=pltpu.CompilerParams(
            dimension_semantics=("parallel",),       # megacore over batch on v7x
            vmem_limit_bytes=32 * 1024 * 1024,       # headroom, safe on 64 MiB v7x
        ),
    )(x_unf, w_pad, b_pad)

    return out_padded[:, :Fout]


def cnn_reference(x_ncl, weight_fck, bias_f):
    """Pure-JAX f32 reference (same math as nn.Conv1d + relu + max over time)."""
    B, C, L = x_ncl.shape
    Fout, _, K = weight_fck.shape
    L_out = L - K + 1
    out = jnp.zeros((B, Fout, L_out), jnp.float32)
    for k in range(K):
        out = out + jnp.einsum("bcl,fc->bfl", x_ncl[:, :, k:k + L_out],
                               weight_fck[:, :, k])
    out = out + bias_f[None, :, None]
    out = jnp.maximum(out, 0.0)
    return jnp.max(out, axis=2)


if __name__ == "__main__":
    # Small shapes consistent with the module.
    batch_size = 2
    char_embed_size = 4
    max_word_length = 16
    num_filters = 8
    kernel_size = 5

    key = jax.random.PRNGKey(0)
    k_x, k_w, k_b = jax.random.split(key, 3)

    # Deterministic init (uniform(-sqrt(1/(C*K)), sqrt(1/(C*K))), like nn.Conv1d).
    bound = (1.0 / (char_embed_size * kernel_size)) ** 0.5
    weight = jax.random.uniform(
        k_w, (num_filters, char_embed_size, kernel_size),
        minval=-bound, maxval=bound, dtype=jnp.float32)
    bias = jax.random.uniform(
        k_b, (num_filters,), minval=-bound, maxval=bound, dtype=jnp.float32)

    x_char_emb = jax.random.normal(
        k_x, (batch_size, char_embed_size, max_word_length), dtype=jnp.float32)

    out = cnn_forward(x_char_emb, weight, bias)
    out = jax.block_until_ready(out)

    ref = cnn_reference(x_char_emb, weight, bias)
    assert out.shape == (batch_size, num_filters)
    # bf16 MXU operands with f32 accumulate -> loosened tolerance vs f32 reference.
    assert jnp.allclose(out, ref, atol=3e-2, rtol=3e-2)

    print("KERNEL_OK")
</pallas_src>

<mosaic_0001>
module attributes {stable_mosaic.version = 11 : i64} {
  func.func @cnn_kernel(%arg0: i32, %arg1: memref<2x16x128xbf16, #tpu.memory_space<vmem>>, %arg2: memref<128x128xbf16, #tpu.memory_space<vmem>>, %arg3: memref<1x128xf32, #tpu.memory_space<vmem>>, %arg4: memref<2x128xf32, #tpu.memory_space<vmem>>) attributes {dimension_semantics = [#tpu.dimension_semantics<parallel>], iteration_bounds = array<i64: 1>, scalar_prefetch = 0 : i64, scratch_operands = 0 : i64, tpu.core_type = #tpu.core_type<tc>, window_params = [{transform_indices = @transform_0, window_bounds = array<i64: 2, 16, 128>}, {pipeline_mode = #tpu.pipeline_mode<synchronous>, transform_indices = @transform_1, window_bounds = array<i64: 128, 128>}, {pipeline_mode = #tpu.pipeline_mode<synchronous>, transform_indices = @transform_2, window_bounds = array<i64: 1, 128>}, {transform_indices = @transform_3, window_bounds = array<i64: 2, 128>}]} {
    %c0 = arith.constant 0 : index
    %c0_0 = arith.constant 0 : index
    %c0_1 = arith.constant 0 : index
    %0 = vector.load %arg1[%c0, %c0_0, %c0_1] : memref<2x16x128xbf16, #tpu.memory_space<vmem>>, vector<2x16x128xbf16>
    %1 = vector.shape_cast %0 : vector<2x16x128xbf16> to vector<32x128xbf16>
    %c0_2 = arith.constant 0 : index
    %c0_3 = arith.constant 0 : index
    %2 = vector.load %arg2[%c0_2, %c0_3] : memref<128x128xbf16, #tpu.memory_space<vmem>>, vector<128x128xbf16>
    %cst = arith.constant dense<0.000000e+00> : vector<32x128xf32>
    %3 = tpu.matmul %1, %2, %cst {dimension_numbers = #tpu.dot_dimension_numbers<[1], [0], [0], [1], [0, 0, 1, 1], [], []>} : vector<32x128xbf16>, vector<128x128xbf16>, vector<32x128xf32> -> vector<32x128xf32>
    %4 = vector.shape_cast %3 : vector<32x128xf32> to vector<2x16x128xf32>
    %cst_4 = arith.constant dense<0xFF800000> : vector<2x128xf32>
    %5 = vector.multi_reduction <maximumf>, %4, %cst_4 [1] : vector<2x16x128xf32> to vector<2x128xf32>
    %c0_5 = arith.constant 0 : index
    %c0_6 = arith.constant 0 : index
    %6 = vector.load %arg3[%c0_5, %c0_6] : memref<1x128xf32, #tpu.memory_space<vmem>>, vector<1x128xf32>
    %7 = vector.broadcast %6 : vector<1x128xf32> to vector<2x128xf32>
    %8 = arith.addf %5, %7 : vector<2x128xf32>
    %cst_7 = arith.constant 0.000000e+00 : f32
    %9 = vector.broadcast %cst_7 : f32 to vector<2x128xf32>
    %10 = arith.maximumf %8, %9 : vector<2x128xf32>
    %c0_8 = arith.constant 0 : index
    %c0_9 = arith.constant 0 : index
    %11 = vector.load %arg4[%c0_8, %c0_9] : memref<2x128xf32, #tpu.memory_space<vmem>>, vector<2x128xf32>
    tpu.vector_store %arg4[%c0_8, %c0_9], %10 {strides = array<i32>} : memref<2x128xf32, #tpu.memory_space<vmem>>, vector<2x128xf32>,
    return
  }
  func.func @transform_0(%arg0: i32) -> (i32, i32, i32) {
    %c0_i32 = arith.constant 0 : i32
    %c0_i32_0 = arith.constant 0 : i32
    %c0_i32_1 = arith.constant 0 : i32
    return %arg0, %c0_i32, %c0_i32_0 : i32, i32, i32
  }
  func.func @transform_1(%arg0: i32) -> (i32, i32) {
    %c0_i32 = arith.constant 0 : i32
    %c0_i32_0 = arith.constant 0 : i32
    %c0_i32_1 = arith.constant 0 : i32
    return %c0_i32, %c0_i32_0 : i32, i32
  }
  func.func @transform_2(%arg0: i32) -> (i32, i32) {
    %c0_i32 = arith.constant 0 : i32
    %c0_i32_0 = arith.constant 0 : i32
    %c0_i32_1 = arith.constant 0 : i32
    return %c0_i32, %c0_i32_0 : i32, i32
  }
  func.func @transform_3(%arg0: i32) -> (i32, i32) {
    %c0_i32 = arith.constant 0 : i32
    %c0_i32_0 = arith.constant 0 : i32
    return %arg0, %c0_i32 : i32, i32
  }
}

</mosaic_0001>

<bundles_post_ra>
// kernel: tpu_custom_call.1
= control target key start
LH: loop header
LB: loop body
LE: loop exit
PB: predicated region body
PF: predicated region fallthrough
CT: control target
= control target key end

     0   :  { %8 = vsyncpa [#allocation3], 0  ;;  %s372_s0 = inlined_call_operand.hbm [shape: bf16[2,16,128], index: 0, kind: input, shape index: {}]   ;;  %s373_s1 = inlined_call_operand.hbm [shape: bf16[128,128], index: 1, kind: input, shape index: {}]   ;;  %s374_s2 = inlined_call_operand.vmem [shape: f32[1,128], index: 2, kind: input, shape index: {}]   ;;  %s375_s3 = inlined_call_operand.hbm [shape: f32[2,128], index: 3, kind: output, shape index: {}]  }
   0x1   :  { %9 = vsyncpa [#allocation6], 0 }
   0x2   :  { %10 = vsyncpa [#allocation4], 0  ;;  %s15_s14 = sshll.u32 %s372_s0, 4  ;;  %s335_s15 = smov [#allocation2]   ;;  %s16_s14 = int_to_ptr.hbm [resolvable:$true] %s15_s14 }
   0x3   :  { %s17_s16 = sshll.u32 %s335_s15, 4  ;;  %s28_s19 = sshll.u32 %s373_s1, 4  ;;  %s18_s16 = int_to_ptr.vmem [resolvable:$true] %s17_s16  ;;  %s29_s19 = int_to_ptr.hbm [resolvable:$true] %s28_s19 }
   0x4   :  { %s336_s20 = smov 64   ;;  %s337_s21 = smov 4  }
   0x5   :  { %23 = dma.hbm_to_vmem [thread:$0]  %s16_s14, 256, %s18_s16, [#allocation3], %s336_s20, %s336_s20, %s337_s21  }
   0x6   :  { %s338_s22 = smov [#allocation5]  }
   0x7   :  { %s30_s23 = sshll.u32 %s338_s22, 4  ;;  %s31_s23 = int_to_ptr.vmem [resolvable:$true] %s30_s23 }
   0x8   :  { %36 = dma.hbm_to_vmem [thread:$0]  %s29_s19, 1024, %s31_s23, [#allocation6], %s336_s20, %s336_s20, %s337_s21  }
   0x9   :  { %329 = dma.done.wait [#allocation3], 256  }
   0xa   :  { %330 = vsyncadd [#allocation3], 4294967040 }
   0xb   :  { %331 = dma.done.wait [#allocation6], 1024  }
   0xc   :  { %332 = vsyncadd [#allocation6], 4294966272  ;;  %v242_v0 = vld [vmem:[#allocation5 + $0x38] sm:$0xff]  ;;  %v241_v1 = vld [vmem:[#allocation5 + $0x30] sm:$0xff]  ;;  %s339_s24 = smov [#allocation7]   ;;  %s182_s28 = sshll.u32 %s375_s3, 4  ;;  %s183_s28 = int_to_ptr.hbm [resolvable:$true] %s182_s28 }
   0xd   :  { %127 = vmatpush.bf16.msra.mxu0 %v242_v0  ;;  %243 = vmatpush.bf16.msra.mxu1 %v242_v0  ;;  %v240_v2 = vld [vmem:[#allocation5 + $0x28] sm:$0xff]  ;;  %v239_v3 = vld [vmem:[#allocation5 + $0x20] sm:$0xff]  ;;  %v238_v4 = vld [vmem:[#allocation5 + $0x18] sm:$0xff]  ;;  %s180_s25 = sshll.u32 %s339_s24, 4  ;;  %vm171_vm0 = vcmask 1041409   ;;  %s181_s25 = int_to_ptr.vmem [resolvable:$true] %s180_s25 }
   0xe   :  { %v237_v5 = vld [vmem:[#allocation5 + $0x10] sm:$0xff]  ;;  %v236_v6 = vld [vmem:[#allocation5 + $0x8] sm:$0xff]  ;;  %v235_v7 = vld [vmem:[#allocation5] sm:$0xff] }
   0xf   :  { %v233_v8 = vld [vmem:[#allocation2] sm:$0xff]  ;;  %v234_v9 = vld [vmem:[#allocation2 + $0x8] sm:$0xff] }
  0x10   :  { %v256_v25 = vld [vmem:[%s374_s2] ss:$0 sm:$0xff] }
  0x11   :  { %128 = vmatpush.bf16.msra.mxu0 %v241_v1  ;;  %244 = vmatpush.bf16.msra.mxu1 %v241_v1 }
  0x15   :  { %129 = vmatpush.bf16.msra.mxu0 %v240_v2  ;;  %245 = vmatpush.bf16.msra.mxu1 %v240_v2 }
  0x19   :  { %130 = vmatpush.bf16.msra.mxu0 %v239_v3  ;;  %246 = vmatpush.bf16.msra.mxu1 %v239_v3 }
  0x1d   :  { %131 = vmatpush.bf16.msra.mxu0 %v238_v4  ;;  %247 = vmatpush.bf16.msra.mxu1 %v238_v4 }
  0x21   :  { %132 = vmatpush.bf16.msra.mxu0 %v237_v5  ;;  %248 = vmatpush.bf16.msra.mxu1 %v237_v5 }
  0x25   :  { %133 = vmatpush.bf16.msra.mxu0 %v236_v6  ;;  %249 = vmatpush.bf16.msra.mxu1 %v236_v6 }
  0x29   :  { %134 = vmatpush.bf16.msra.mxu0 %v235_v7  ;;  %250 = vmatpush.bf16.msra.mxu1 %v235_v7 }
  0x2c   :  { %135 = vmatmul.bf16.vlgmr.msra.gmra.mxu0 %v233_v8  ;;  %140 = vmatmul.bf16.vlgmr.msra.gmra.mxu1 %v234_v9 }
  0xa9   :  { %v136_v10 = vpop.f32.mrf.mxu0  ;;  %v141_v11 = vpop.f32.mrf.mxu1 }
  0xb1   :  { %v138_v12 = vpop.f32.mrf.mxu0  ;;  %v143_v13 = vpop.f32.mrf.mxu1 }
  0xb2   :  { %v146_v14 = vmax.f32 %v136_v10, %v138_v12  ;;  %v153_v15 = vmax.f32 %v141_v11, %v143_v13 }
  0xb4   :  { %v147_v16 = vrot.slane %v146_v14, 4  ;;  %v154_v17 = vrot.slane %v153_v15, 4 }
  0xb6   :  { %v148_v18 = vmax.f32 %v146_v14, %v147_v16  ;;  %v155_v19 = vmax.f32 %v153_v15, %v154_v17 }
  0xb8   :  { %v149_v20 = vrot.slane %v148_v18, 2  ;;  %v156_v21 = vrot.slane %v155_v19, 2 }
  0xba   :  { %v150_v22 = vmax.f32 %v148_v18, %v149_v20  ;;  %v157_v23 = vmax.f32 %v155_v19, %v156_v21 }
  0xbc   :  { %v151_v24 = vrot.slane %v150_v22, 1  ;;  %v158_v26 = vrot.slane %v157_v23, 1 }
  0xbe   :  { %v152_v27 = vmax.f32 %v150_v22, %v151_v24  ;;  %v159_v28 = vmax.f32 %v157_v23, %v158_v26 }
  0xc0   :  { %v164_v29 = vadd.f32 %v256_v25, %v152_v27  ;;  %v165_v30 = vadd.f32 %v256_v25, %v159_v28 }
  0xc2   :  { %v167_v31 = vmax.f32 %v165_v30, 0.0  ;;  %v166_v32 = vmax.f32 %v164_v29, 0.0 }
  0xc4   :  { %v170_v33 = vrot.slane %v167_v31, 7 }
  0xc6   :  { %v172_v34 = vsel %vm171_vm0, %v170_v33, %v166_v32 }
  0xc7   :  { %174 = vst [vmem:[#allocation7] sm:$0x3] %v172_v34 }
  0xc8   :  { %185 = dma.vmem_to_hbm [thread:$0]  %s181_s25, 32, %s183_s28, [#allocation4]  }
  0xc9   :  { %333 = dma.done.wait [#allocation4], 32  }
  0xca   :  { %334 = vsyncadd [#allocation4], 4294967264 }
  0xcb   :  { %190 = vsyncpa [#allocation3], 1 }
  0xcc   :  { %191 = vsyncpa [#allocation6], 1 }
  0xcd   :  { %192 = vsyncpa [#allocation4], 1 }

</bundles_post_ra>
